<compile_context>
chip_gen: v5e
topology: v5e:2x2
jax: 0.10.0
libtpu: 0.0.40
codegen_flags: <defaults>
</compile_context>

<pallas_src>
import functools

import jax
import jax.numpy as jnp
from jax.experimental import pallas as pl
from jax.experimental.pallas import tpu as pltpu

_LANE = 128


def _mlp_kernel(x_ref, w0_ref, b0_ref, w1_ref, b1_ref, w2_ref, b2_ref, o_ref):
    """One grid step processes a TM-row tile of x through the full MLP."""
    x = x_ref[...]

    # Layer 0: Linear(input_dim -> hidden_dim_padded) + Dropout(identity) + ReLU
    h = jnp.dot(x, w0_ref[...], preferred_element_type=jnp.float32) + b0_ref[...]
    h = jnp.maximum(h, 0.0)

    # Layer 1: Linear(hidden -> hidden) + Dropout(identity) + ReLU
    h = jnp.dot(h.astype(w1_ref.dtype), w1_ref[...],
                preferred_element_type=jnp.float32) + b1_ref[...]
    h = jnp.maximum(h, 0.0)

    # Output layer: Linear(hidden -> no_bins_padded), no activation
    out = jnp.dot(h.astype(w2_ref.dtype), w2_ref[...],
                  preferred_element_type=jnp.float32) + b2_ref[...]
    o_ref[...] = out.astype(o_ref.dtype)


def _round_up(x, m):
    return ((x + m - 1) // m) * m


def _pick_tm(m, tm):
    """Pick a sublane-aligned row tile.

    Auto mode aims for >= ~8 grid steps (keeps both v7x TensorCores busy) while capping the
    tile at 1024 rows (big enough to sit at the HBM roofline).
    """
    if tm is None:
        tm = min(1024, -(-m // 8))  # cdiv(m, 8), capped
    return max(8, _round_up(int(tm), 8))


def distance_prediction_head(x, params, *, tm=None):
    """Apply the DistancePredictionHead forward pass (no_hidden_layers=2, eval-mode dropout).

    x: [..., input_dim]
    params: dict with w0,b0,w1,b1,w2,b2 ; w* are [in_dim, out_dim], b* are [1, out_dim]
    returns: [..., no_bins]
    """
    w0, b0 = params["w0"], params["b0"]
    w1, b1 = params["w1"], params["b1"]
    w2, b2 = params["w2"], params["b2"]

    input_dim = w0.shape[0]
    hidden_dim = w0.shape[1]
    no_bins = w2.shape[1]

    # --- Lane-dense feature padding (zero columns/rows; numerically a no-op). ---
    h_pad = _round_up(max(hidden_dim, 1), _LANE)
    nb_pad = _round_up(max(no_bins, 1), _LANE)
    if h_pad != hidden_dim:
        dh = h_pad - hidden_dim
        w0 = jnp.pad(w0, ((0, 0), (0, dh)))
        b0 = jnp.pad(b0, ((0, 0), (0, dh)))
        w1 = jnp.pad(w1, ((0, dh), (0, dh)))
        b1 = jnp.pad(b1, ((0, 0), (0, dh)))
        w2 = jnp.pad(w2, ((0, dh), (0, 0)))
    if nb_pad != no_bins:
        dn = nb_pad - no_bins
        w2 = jnp.pad(w2, ((0, 0), (0, dn)))
        b2 = jnp.pad(b2, ((0, 0), (0, dn)))

    lead = x.shape[:-1]
    x2 = x.reshape(-1, input_dim)
    m = x2.shape[0]

    tm = _pick_tm(m, tm)
    grid = (pl.cdiv(m, tm),)  # ragged last block: rows independent, OOB stores masked

    # VMEM working-set estimate: double-buffered x/out tiles + resident weights + activations.
    itemsize = jnp.dtype(x.dtype).itemsize
    weight_bytes = sum(int(a.size) * jnp.dtype(a.dtype).itemsize
                       for a in (w0, b0, w1, b1, w2, b2))
    ws = (2 * tm * input_dim * itemsize          # x tiles (double-buffered)
          + 2 * tm * nb_pad * itemsize           # out tiles (double-buffered)
          + 3 * tm * h_pad * 4                   # f32 intermediates
          + weight_bytes)
    vmem_limit = int(min(64 * 2**20, max(32 * 2**20, 2 * ws)))

    full = lambda arr: pl.BlockSpec(arr.shape, lambda i: (0,) * arr.ndim)

    out = pl.pallas_call(
        _mlp_kernel,
        out_shape=jax.ShapeDtypeStruct((m, nb_pad), x.dtype),
        grid_spec=pltpu.PrefetchScalarGridSpec(
            num_scalar_prefetch=0,
            grid=grid,
            in_specs=[
                pl.BlockSpec((tm, input_dim), lambda i: (i, 0)),
                full(w0), full(b0),
                full(w1), full(b1),
                full(w2), full(b2),
            ],
            out_specs=pl.BlockSpec((tm, nb_pad), lambda i: (i, 0)),
        ),
        compiler_params=pltpu.CompilerParams(
            dimension_semantics=("parallel",),
            vmem_limit_bytes=vmem_limit,
        ),
    )(x2, w0, b0, w1, b1, w2, b2)

    if nb_pad != no_bins:
        out = out[:, :no_bins]
    return out.reshape(*lead, no_bins)


def init_params(key, input_dim, hidden_dim, no_bins, dtype=jnp.float32):
    """Deterministic synthetic parameters (shapes match the PyTorch module with
    no_hidden_layers=2: Linear(in,h), Linear(h,h), Linear(h,bins))."""
    ks = jax.random.split(key, 6)
    scale = 0.05
    return {
        "w0": (scale * jax.random.normal(ks[0], (input_dim, hidden_dim))).astype(dtype),
        "b0": (scale * jax.random.normal(ks[1], (1, hidden_dim))).astype(dtype),
        "w1": (scale * jax.random.normal(ks[2], (hidden_dim, hidden_dim))).astype(dtype),
        "b1": (scale * jax.random.normal(ks[3], (1, hidden_dim))).astype(dtype),
        "w2": (scale * jax.random.normal(ks[4], (hidden_dim, no_bins))).astype(dtype),
        "b2": (scale * jax.random.normal(ks[5], (1, no_bins))).astype(dtype),
    }


def _reference(x, params):
    h = jnp.maximum(x @ params["w0"] + params["b0"][0], 0.0)
    h = jnp.maximum(h @ params["w1"] + params["b1"][0], 0.0)
    return h @ params["w2"] + params["b2"][0]


if __name__ == "__main__":
    # Module hyperparameters (no_hidden_layers=2, dropout inert at inference).
    input_dim, hidden_dim, no_bins = 32, 32, 16

    key = jax.random.PRNGKey(0)
    k_x, k_p = jax.random.split(key)

    # x: [batch=2, seq=8, input_dim=32]
    x = jax.random.normal(k_x, (2, 8, input_dim), dtype=jnp.float32)
    params = init_params(k_p, input_dim, hidden_dim, no_bins)

    fn = jax.jit(functools.partial(distance_prediction_head, params=params))
    out = fn(x)
    jax.block_until_ready(out)

    ref = _reference(x.reshape(-1, input_dim), params).reshape(2, 8, no_bins)
    assert out.shape == (2, 8, no_bins), out.shape
    assert jnp.allclose(out, ref, atol=1e-4, rtol=1e-4), "mismatch vs reference"

    print("KERNEL_OK")
</pallas_src>

<mosaic_0001>
module attributes {stable_mosaic.version = 11 : i64} {
  func.func @_mlp_kernel(%arg0: i32, %arg1: memref<8x32xf32, #tpu.memory_space<vmem>>, %arg2: memref<32x128xf32, #tpu.memory_space<vmem>>, %arg3: memref<1x128xf32, #tpu.memory_space<vmem>>, %arg4: memref<128x128xf32, #tpu.memory_space<vmem>>, %arg5: memref<1x128xf32, #tpu.memory_space<vmem>>, %arg6: memref<128x128xf32, #tpu.memory_space<vmem>>, %arg7: memref<1x128xf32, #tpu.memory_space<vmem>>, %arg8: memref<8x128xf32, #tpu.memory_space<vmem>>) attributes {dimension_semantics = [#tpu.dimension_semantics<parallel>], iteration_bounds = array<i64: 2>, scalar_prefetch = 0 : i64, scratch_operands = 0 : i64, tpu.core_type = #tpu.core_type<tc>, window_params = [{transform_indices = @transform_0, window_bounds = array<i64: 8, 32>}, {pipeline_mode = #tpu.pipeline_mode<synchronous>, transform_indices = @transform_1, window_bounds = array<i64: 32, 128>}, {pipeline_mode = #tpu.pipeline_mode<synchronous>, transform_indices = @transform_2, window_bounds = array<i64: 1, 128>}, {pipeline_mode = #tpu.pipeline_mode<synchronous>, transform_indices = @transform_3, window_bounds = array<i64: 128, 128>}, {pipeline_mode = #tpu.pipeline_mode<synchronous>, transform_indices = @transform_4, window_bounds = array<i64: 1, 128>}, {pipeline_mode = #tpu.pipeline_mode<synchronous>, transform_indices = @transform_5, window_bounds = array<i64: 128, 128>}, {pipeline_mode = #tpu.pipeline_mode<synchronous>, transform_indices = @transform_6, window_bounds = array<i64: 1, 128>}, {transform_indices = @transform_7, window_bounds = array<i64: 8, 128>}]} {
    %c0 = arith.constant 0 : index
    %c0_0 = arith.constant 0 : index
    %0 = vector.load %arg1[%c0, %c0_0] : memref<8x32xf32, #tpu.memory_space<vmem>>, vector<8x32xf32>
    %c0_1 = arith.constant 0 : index
    %c0_2 = arith.constant 0 : index
    %1 = vector.load %arg2[%c0_1, %c0_2] : memref<32x128xf32, #tpu.memory_space<vmem>>, vector<32x128xf32>
    %cst = arith.constant dense<0.000000e+00> : vector<8x128xf32>
    %2 = tpu.matmul %0, %1, %cst {dimension_numbers = #tpu.dot_dimension_numbers<[1], [0], [0], [1], [0, 0, 1, 1], [], []>} : vector<8x32xf32>, vector<32x128xf32>, vector<8x128xf32> -> vector<8x128xf32>
    %c0_3 = arith.constant 0 : index
    %c0_4 = arith.constant 0 : index
    %3 = vector.load %arg3[%c0_3, %c0_4] : memref<1x128xf32, #tpu.memory_space<vmem>>, vector<1x128xf32>
    %4 = vector.broadcast %3 : vector<1x128xf32> to vector<8x128xf32>
    %5 = arith.addf %2, %4 : vector<8x128xf32>
    %cst_5 = arith.constant 0.000000e+00 : f32
    %6 = vector.broadcast %cst_5 : f32 to vector<8x128xf32>
    %7 = arith.maximumf %5, %6 : vector<8x128xf32>
    %c0_6 = arith.constant 0 : index
    %c0_7 = arith.constant 0 : index
    %8 = vector.load %arg4[%c0_6, %c0_7] : memref<128x128xf32, #tpu.memory_space<vmem>>, vector<128x128xf32>
    %cst_8 = arith.constant dense<0.000000e+00> : vector<8x128xf32>
    %9 = tpu.matmul %7, %8, %cst_8 {dimension_numbers = #tpu.dot_dimension_numbers<[1], [0], [0], [1], [0, 0, 1, 1], [], []>} : vector<8x128xf32>, vector<128x128xf32>, vector<8x128xf32> -> vector<8x128xf32>
    %c0_9 = arith.constant 0 : index
    %c0_10 = arith.constant 0 : index
    %10 = vector.load %arg5[%c0_9, %c0_10] : memref<1x128xf32, #tpu.memory_space<vmem>>, vector<1x128xf32>
    %11 = vector.broadcast %10 : vector<1x128xf32> to vector<8x128xf32>
    %12 = arith.addf %9, %11 : vector<8x128xf32>
    %cst_11 = arith.constant 0.000000e+00 : f32
    %13 = vector.broadcast %cst_11 : f32 to vector<8x128xf32>
    %14 = arith.maximumf %12, %13 : vector<8x128xf32>
    %c0_12 = arith.constant 0 : index
    %c0_13 = arith.constant 0 : index
    %15 = vector.load %arg6[%c0_12, %c0_13] : memref<128x128xf32, #tpu.memory_space<vmem>>, vector<128x128xf32>
    %cst_14 = arith.constant dense<0.000000e+00> : vector<8x128xf32>
    %16 = tpu.matmul %14, %15, %cst_14 {dimension_numbers = #tpu.dot_dimension_numbers<[1], [0], [0], [1], [0, 0, 1, 1], [], []>} : vector<8x128xf32>, vector<128x128xf32>, vector<8x128xf32> -> vector<8x128xf32>
    %c0_15 = arith.constant 0 : index
    %c0_16 = arith.constant 0 : index
    %17 = vector.load %arg7[%c0_15, %c0_16] : memref<1x128xf32, #tpu.memory_space<vmem>>, vector<1x128xf32>
    %18 = vector.broadcast %17 : vector<1x128xf32> to vector<8x128xf32>
    %19 = arith.addf %16, %18 : vector<8x128xf32>
    %c0_17 = arith.constant 0 : index
    %c0_18 = arith.constant 0 : index
    %20 = vector.load %arg8[%c0_17, %c0_18] : memref<8x128xf32, #tpu.memory_space<vmem>>, vector<8x128xf32>
    tpu.vector_store %arg8[%c0_17, %c0_18], %19 {strides = array<i32>} : memref<8x128xf32, #tpu.memory_space<vmem>>, vector<8x128xf32>,
    return
  }
  func.func @transform_0(%arg0: i32) -> (i32, i32) {
    %c0_i32 = arith.constant 0 : i32
    %c0_i32_0 = arith.constant 0 : i32
    return %arg0, %c0_i32 : i32, i32
  }
  func.func @transform_1(%arg0: i32) -> (i32, i32) {
    %c0_i32 = arith.constant 0 : i32
    %c0_i32_0 = arith.constant 0 : i32
    %c0_i32_1 = arith.constant 0 : i32
    return %c0_i32, %c0_i32_0 : i32, i32
  }
  func.func @transform_2(%arg0: i32) -> (i32, i32) {
    %c0_i32 = arith.constant 0 : i32
    %c0_i32_0 = arith.constant 0 : i32
    %c0_i32_1 = arith.constant 0 : i32
    return %c0_i32, %c0_i32_0 : i32, i32
  }
  func.func @transform_3(%arg0: i32) -> (i32, i32) {
    %c0_i32 = arith.constant 0 : i32
    %c0_i32_0 = arith.constant 0 : i32
    %c0_i32_1 = arith.constant 0 : i32
    return %c0_i32, %c0_i32_0 : i32, i32
  }
  func.func @transform_4(%arg0: i32) -> (i32, i32) {
    %c0_i32 = arith.constant 0 : i32
    %c0_i32_0 = arith.constant 0 : i32
    %c0_i32_1 = arith.constant 0 : i32
    return %c0_i32, %c0_i32_0 : i32, i32
  }
  func.func @transform_5(%arg0: i32) -> (i32, i32) {
    %c0_i32 = arith.constant 0 : i32
    %c0_i32_0 = arith.constant 0 : i32
    %c0_i32_1 = arith.constant 0 : i32
    return %c0_i32, %c0_i32_0 : i32, i32
  }
  func.func @transform_6(%arg0: i32) -> (i32, i32) {
    %c0_i32 = arith.constant 0 : i32
    %c0_i32_0 = arith.constant 0 : i32
    %c0_i32_1 = arith.constant 0 : i32
    return %c0_i32, %c0_i32_0 : i32, i32
  }
  func.func @transform_7(%arg0: i32) -> (i32, i32) {
    %c0_i32 = arith.constant 0 : i32
    %c0_i32_0 = arith.constant 0 : i32
    return %arg0, %c0_i32 : i32, i32
  }
}

</mosaic_0001>

<bundles_post_ra>
// kernel: distance_prediction_head.1
= control target key start
LH: loop header
LB: loop body
LE: loop exit
PB: predicated region body
PF: predicated region fallthrough
CT: control target
= control target key end

     0   :  { %12 = vsyncpa [#allocation3], 0  ;;  %s1060_s0 = inlined_call_operand.hbm [shape: f32[16,32], index: 0, kind: input, shape index: {}]   ;;  %s1061_s1 = inlined_call_operand.hbm [shape: f32[32,128], index: 1, kind: input, shape index: {}]   ;;  %s1062_s2 = inlined_call_operand.hbm [shape: f32[1,128], index: 2, kind: input, shape index: {}]   ;;  %s1063_s3 = inlined_call_operand.hbm [shape: f32[128,128], index: 3, kind: input, shape index: {}]   ;;  %s1064_s4 = inlined_call_operand.vmem [shape: f32[1,128], index: 4, kind: input, shape index: {}]   ;;  %s1065_s5 = inlined_call_operand.hbm [shape: f32[128,128], index: 5, kind: input, shape index: {}]   ;;  %s1066_s6 = inlined_call_operand.vmem [shape: f32[1,128], index: 6, kind: input, shape index: {}]   ;;  %s1067_s7 = inlined_call_operand.vmem [shape: f32[16,128], index: 7, kind: output, shape index: {}]  }
   0x1   :  { %14 = vsyncpa [#allocation3 + $0x1], 0 }
   0x2   :  { %15 = vsyncpa [#allocation5], 0 }
   0x3   :  { %16 = vsyncpa [#allocation8], 0  ;;  %s923_s24 = smov 0   ;;  %s925_s25 = smov 0  }
   0x4   :  { %s927_s26 = smov 0   ;;  %s929_s27 = smov 0  }
   0x5 LB: > { %s216_s30 = sshll.u32 %s1061_s1, 4  ;;  %s947_s8 = sadd.s32 4294967295, %s875_s27   ;;  %s875_s27 = sphi %s929_s27, %s1075_s27   ;;  %s871_s26 = sphi %s927_s26, %s1074_s26   ;;  %s867_s25 = sphi %s925_s25, %s1073_s25   ;;  %s863_s24 = sphi %s923_s24, %s1072_s24   ;;  %s217_s30 = int_to_ptr.hbm [resolvable:$true] %s216_s30 }
   0x6   : > { %p580_p0 = scmp.ge.s32.totalorder %s875_s27, 1  ;;  %p43_p1 = scmp.eq.s32.totalorder %s947_s8, 0 }
   0x7   : > { %p205_p2 = scmp.lt.s32.totalorder %s875_s27, 3  ;;  %s877_s10 = smov [#allocation4]  }
   0x8   : > { %s218_s11 = sshll.u32 %s877_s10, 4  ;;  %s242_s14 = sshll.u32 %s1063_s3, 4  ;;  %s219_s11 = int_to_ptr.vmem [resolvable:$true] %s218_s11  ;;  %s243_s14 = int_to_ptr.hbm [resolvable:$true] %s242_s14 }
   0x9   : > { %p952_p3 = pnand %p580_p0, %p205_p2  ;;  %s231_s18 = sshll.u32 %s1062_s2, 4  ;;  %s232_s18 = int_to_ptr.hbm [resolvable:$true] %s231_s18 }
   0xa   : > { %s878_s19 = smov [#allocation7]   ;;  %s879_s21 = smov 128  }
   0xb   : > { %p616_p4 = pneg %p952_p3  ;;  %s244_s20 = sshll.u32 %s878_s19, 4  ;;  %s245_s20 = int_to_ptr.vmem [resolvable:$true] %s244_s20 }
   0xc   : > { %s880_s22 = smov 8   ;;  %s259_s29 = sshll.u32 %s1065_s5, 4  ;;  %s260_s29 = int_to_ptr.hbm [resolvable:$true] %s259_s29 }
   0xd   : > { %p963_p5 = pnand %p616_p4, %p43_p1  ;;  %s881_s10 = smov [#allocation6]  }
   0xe   : > { %s233_s12 = sshll.u32 %s881_s10, 4  ;;  %s982_s13 = sadd.s32 1, %s875_s27   ;;  %s234_s12 = int_to_ptr.vmem [resolvable:$true] %s233_s12 }
   0xf   : > { %619 = dma.hbm_to_vmem [thread:$0]  (!%p963_p5), %s217_s30, 512, %s219_s11, [#allocation5], %s879_s21, %s879_s21, %s880_s22  }
  0x10   : > { %625 = dma.hbm_to_vmem [thread:$0]  (!%p963_p5), %s243_s14, 2048, %s245_s20, [#allocation8], %s879_s21, %s879_s21, %s880_s22  }
  0x11   : > { %622 = dma.hbm_to_vmem [thread:$0]  (!%p963_p5), %s232_s18, 16, %s234_s12, [#allocation5]  }
  0x12   : > { %s882_s30 = smov [#allocation9]   ;;  %s26_s14 = ssub.s32 %s875_s27, %s982_s13 }
  0x13   : > { %s261_s11 = sshll.u32 %s882_s30, 4  ;;  %s29_s16 = sadd.s32 1, %s871_s26  ;;  %s262_s11 = int_to_ptr.vmem [resolvable:$true] %s261_s11 }
  0x14   : > { %628 = dma.hbm_to_vmem [thread:$0]  (!%p963_p5), %s260_s29, 2048, %s262_s11, [#allocation8], %s879_s21, %s879_s21, %s880_s22  }
  0x15   : > { %p27_p6 = scmp.eq.s32.totalorder %s26_s14, 0  ;;  %p36_p7 = scmp.ne.s32.totalorder %s871_s26, %s867_s25 }
  0x16   : > { %p37_p8 = scmp.eq.s32.totalorder %s875_s27, 0  ;;  %p42_p9 = scmp.ne.s32.totalorder %s867_s25, %s863_s24 }
  0x17   : > { %s993_s17 = scalar_select %p27_p6, %s871_s26, %s29_s16  }
  0x18   : > { %p997_p10 = por %p43_p1, %p42_p9  ;;  %p637_p11 = scmp.lt.s32.totalorder %s875_s27, 2 }
  0x19   : > { %s278_s19 = sand.u32 1, %s871_s26   ;;  %s587_s15 = sshll.u32 %s875_s27, 3 }
  0x1a   : > { %p38_p12 = por %p37_p8, %p36_p7  ;;  %s586_s20 = sshll.u32 %s278_s19, 3 }
  0x1b   : > { %s286_s23 = scalar_lea.hbm %s1060_s0, %s587_s15  ;;  %s282_s29 = scalar_lea.vmem [#allocation2], %s586_s20 }
  0x1c   : > { %s288_s28 = sshll.u32 %s286_s23, 4  ;;  %s290_s10 = sshll.u32 %s282_s29, 4  ;;  %s289_s28 = int_to_ptr.hbm [resolvable:$true] %s288_s28  ;;  %s291_s10 = int_to_ptr.vmem [resolvable:$true] %s290_s10 }
  0x1d   : > { %p1007_p13 = pnand %p637_p11, %p38_p12  ;;  %s279_s12 = scalar_lea.sflag [#allocation3], %s278_s19 }
  0x1e   : > { %s803_s30 = sshra.s32 %s289_s28, 4  ;;  %s810_s16 = scalar_lea.hbm %s1060_s0, 16  ;;  %s804_s30 = int_to_ptr.hbm [resolvable:$true] %s803_s30 }
  0x1f   : > { %s805_s27 = scalar_lea.hbm %s804_s30, 8  ;;  %p807_p2 = pneg %p1007_p13 }
  0x20   : > { %p806_p0 = scmp.ne.s32.totalorder %s804_s30, %s805_s27  ;;  %p811_p6 = scmp.lt.s32.totalorder %s804_s30, %s1060_s0 }
  0x21   : > { %p812_p7 = scmp.lt.s32.totalorder %s810_s16, %s805_s27 }
  0x22   : > { %p808_p4 = pnand %p807_p2, %p806_p0 }
  0x23   : > { %p813_p8 = por %p812_p7, %p811_p6 }
  0x24   : > { %p809_p5 = pneg %p808_p4 }
  0x26   : > { %p814_p9 = pnand %p813_p8, %p809_p5 }
  0x28   : > { %817 = shalt.err (!%p814_p9)
}
  0x29   : > { %632 = dma.hbm_to_vmem [thread:$0]  (!%p1007_p13), %s289_s28, 128, %s291_s10, %s279_s12  }
  0x2a   : > { %299 = sbr.rel (%p952_p3) target bundleno = 455 (0x1c7), region = 48  ;;  %s301_s19 = sand.u32 (!%p952_p3), 1, %s867_s25  }
  0x2b   : > { %s589_s21 = sshll.u32 (!%p952_p3), %s301_s19, 3  ;;  %s302_s22 = scalar_lea.sflag (!%p952_p3), [#allocation3], %s301_s19 }
  0x2c   : > { %s305_s23 = scalar_lea.vmem (!%p952_p3), [#allocation2], %s589_s21 }
  0x2f   : > { %850 = dma.done.wait (%p997_p10), %s302_s22, 128  }
  0x30   : > { %852 = vsyncadd (%p997_p10), %s302_s22, 4294967168 }
  0x31   : > { %854 = dma.done.wait (%p43_p1), [#allocation5], 528  }
  0x32   : > { %856 = vsyncadd (%p43_p1), [#allocation5], 4294966768 }
  0x33   : > { %858 = dma.done.wait (%p43_p1), [#allocation8], 4096  }
  0x34   : > { %860 = vsyncadd (%p43_p1), [#allocation8], 4294963200  ;;  %v364_v0 = vld [vmem:[#allocation4 + $0x18] sm:$0xff]  ;;  %v363_v1 = vld [vmem:[#allocation4 + $0x10] sm:$0xff]  ;;  %vm369_vm0 = vcmask 261120   ;;  %p356_p1 = scmp.lt.s32.totalorder %s947_s8, 1 }
  0x35   : > { %385 = vmatpush.msra.mxu0 %v364_v0  ;;  %v409_v2 = vld [vmem:[#allocation7 + $0x78] sm:$0xff]  ;;  %v362_v3 = vld [vmem:[#allocation4 + $0x8] sm:$0xff]  ;;  %v408_v4 = vld [vmem:[#allocation7 + $0x70] sm:$0xff] }
  0x36   : > { %414 = vmatpush.msra.mxu1 %v409_v2  ;;  %v407_v5 = vld [vmem:[#allocation7 + $0x68] sm:$0xff]  ;;  %v361_v6 = vld [vmem:[#allocation4] sm:$0xff]  ;;  %v404_v10 = vld [vmem:[#allocation7 + $0x50] sm:$0xff]  ;;  %s1077_s8 = smov (!%p356_p1, %s947_s8), 1 }
  0x37   : > { %386 = vmatpush.msra.mxu0 %v363_v1  ;;  %v360_v7 = vld [vmem:[%s305_s23] sm:$0xff]  ;;  %v406_v8 = vld [vmem:[#allocation7 + $0x60] sm:$0xff]  ;;  %v680_v34 = vld [vmem:[#allocation6] ss:$0 sm:$0xff]  ;;  %s594_s28 = sshll.u32 %s1077_s8, 3 }
  0x38   : > { %415 = vmatpush.msra.mxu1 %v408_v4  ;;  %v405_v9 = vld [vmem:[#allocation7 + $0x58] sm:$0xff]  ;;  %v403_v11 = vld [vmem:[#allocation7 + $0x48] sm:$0xff]  ;;  %v402_v12 = vld [vmem:[#allocation7 + $0x40] sm:$0xff]  ;;  %s359_s30 = scalar_lea.vmem %s1067_s7, %s594_s28 }
  0x39   : > { %387 = vmatpush.msra.mxu0 %v362_v3  ;;  %v401_v13 = vld [vmem:[#allocation7 + $0x38] sm:$0xff]  ;;  %v400_v14 = vld [vmem:[#allocation7 + $0x30] sm:$0xff]  ;;  %v399_v15 = vld [vmem:[#allocation7 + $0x28] sm:$0xff] }
  0x3a   : > { %416 = vmatpush.msra.mxu1 %v407_v5  ;;  %v398_v16 = vld [vmem:[#allocation7 + $0x20] sm:$0xff]  ;;  %v397_v17 = vld [vmem:[#allocation7 + $0x18] sm:$0xff]  ;;  %v396_v18 = vld [vmem:[#allocation7 + $0x10] sm:$0xff] }
  0x3b   : > { %388 = vmatpush.msra.mxu0 %v361_v6  ;;  %v395_v19 = vld [vmem:[#allocation7 + $0x8] sm:$0xff]  ;;  %v394_v20 = vld [vmem:[#allocation7] sm:$0xff]  ;;  %v450_v21 = vld [vmem:[#allocation9 + $0x78] sm:$0xff] }
  0x3c   : > { %595 = vmatmul.msk.f32.vlgmr.msra.gmra.mxu0 %vm369_vm0, %v360_v7  ;;  %417 = vmatpush.msra.mxu1 %v406_v8  ;;  %v449_v22 = vld [vmem:[#allocation9 + $0x70] sm:$0xff]  ;;  %v448_v23 = vld [vmem:[#allocation9 + $0x68] sm:$0xff]  ;;  %v447_v24 = vld [vmem:[#allocation9 + $0x60] sm:$0xff] }
  0x3d   : > { %455 = vmatpush.msra.mxu2 %v450_v21  ;;  %v446_v25 = vld [vmem:[#allocation9 + $0x58] sm:$0xff]  ;;  %v445_v26 = vld [vmem:[#allocation9 + $0x50] sm:$0xff]  ;;  %v444_v27 = vld [vmem:[#allocation9 + $0x48] sm:$0xff] }
  0x3e   : > { %418 = vmatpush.msra.mxu1 %v405_v9  ;;  %v443_v28 = vld [vmem:[#allocation9 + $0x40] sm:$0xff]  ;;  %v442_v29 = vld [vmem:[#allocation9 + $0x38] sm:$0xff]  ;;  %v441_v30 = vld [vmem:[#allocation9 + $0x30] sm:$0xff] }
  0x3f   : > { %456 = vmatpush.msra.mxu2 %v449_v22  ;;  %v440_v31 = vld [vmem:[#allocation9 + $0x28] sm:$0xff]  ;;  %v439_v32 = vld [vmem:[#allocation9 + $0x20] sm:$0xff]  ;;  %v438_v33 = vld [vmem:[#allocation9 + $0x18] sm:$0xff] }
  0x40   : > { %419 = vmatpush.msra.mxu1 %v404_v10  ;;  %v437_v38 = vld [vmem:[#allocation9 + $0x10] sm:$0xff]  ;;  %v436_v39 = vld [vmem:[#allocation9 + $0x8] sm:$0xff]  ;;  %v435_v40 = vld [vmem:[#allocation9] sm:$0xff] }
  0x41   : > { %457 = vmatpush.msra.mxu2 %v448_v23  ;;  %v681_v41 = vld [vmem:[%s1064_s4] ss:$0 sm:$0xff] }
  0x42   : > { %420 = vmatpush.msra.mxu1 %v403_v11  ;;  %v682_v45 = vld [vmem:[%s1066_s6] ss:$0 sm:$0xff] }
  0x43   : > { %458 = vmatpush.msra.mxu2 %v447_v24 }
  0x44   : > { %421 = vmatpush.msra.mxu1 %v402_v12 }
  0x45   : > { %459 = vmatpush.msra.mxu2 %v446_v25 }
  0x46   : > { %422 = vmatpush.msra.mxu1 %v401_v13 }
  0x47   : > { %460 = vmatpush.msra.mxu2 %v445_v26 }
  0x48   : > { %423 = vmatpush.msra.mxu1 %v400_v14 }
  0x49   : > { %461 = vmatpush.msra.mxu2 %v444_v27 }
  0x4a   : > { %424 = vmatpush.msra.mxu1 %v399_v15 }
  0x4b   : > { %462 = vmatpush.msra.mxu2 %v443_v28 }
  0x4c   : > { %425 = vmatpush.msra.mxu1 %v398_v16 }
  0x4d   : > { %463 = vmatpush.msra.mxu2 %v442_v29 }
  0x4e   : > { %426 = vmatpush.msra.mxu1 %v397_v17 }
  0x4f   : > { %464 = vmatpush.msra.mxu2 %v441_v30 }
  0x50   : > { %427 = vmatpush.msra.mxu1 %v396_v18 }
  0x51   : > { %465 = vmatpush.msra.mxu2 %v440_v31 }
  0x52   : > { %428 = vmatpush.msra.mxu1 %v395_v19 }
  0x53   : > { %466 = vmatpush.msra.mxu2 %v439_v32 }
  0x54   : > { %429 = vmatpush.msra.mxu1 %v394_v20 }
  0x55   : > { %467 = vmatpush.msra.mxu2 %v438_v33 }
  0x57   : > { %468 = vmatpush.msra.mxu2 %v437_v38 }
  0x59   : > { %469 = vmatpush.msra.mxu2 %v436_v39 }
  0x5b   : > { %470 = vmatpush.msra.mxu2 %v435_v40 }
  0xb9   : > { %v390_v35 = vpop.f32.mrf.mxu0 }
  0xba   : > { %v391_v36 = vadd.f32 %v680_v34, %v390_v35 }
  0xbc   : > { %v393_v37 = vmax.f32 %v391_v36, 0.0 }
  0xbe   : > { %430 = vmatmul.f32.vlgmr.msra.gmra.mxu1 %v393_v37 }
 0x13b   : > { %v431_v42 = vpop.f32.mrf.mxu1 }
 0x13c   : > { %v432_v43 = vadd.f32 %v681_v41, %v431_v42 }
 0x13e   : > { %v434_v44 = vmax.f32 %v432_v43, 0.0 }
 0x140   : > { %471 = vmatmul.f32.vlgmr.msra.gmra.mxu2 %v434_v44 }
 0x1c3   : > { %v472_v46 = vpop.f32.mrf.mxu2 }
 0x1c4   : > { %v473_v47 = vadd.f32 %v682_v45, %v472_v46 }
 0x1c6   : > { %475 = vst [vmem:[%s359_s30] sm:$0xff] %v473_v47 }
 0x1c7 PF: > { %p19_p3 = scmp.ge.s32.totalorder %s982_s13, 4   ;;  %s1072_s24 = smov %s867_s25 }
 0x1c8   : > { %s1073_s25 = smov %s871_s26  ;;  %s1074_s26 = smov %s993_s17 }
 0x1c9   : > { %s1075_s27 = smov %s982_s13  ;;  %21 = sbr.rel (!%p19_p3) target bundleno = 5 (0x5), region = 104 }
 0x1ce   :  { %495 = vsyncpa [#allocation3], 1 }
 0x1cf   :  { %497 = vsyncpa [#allocation3 + $0x1], 1 }
 0x1d0   :  { %498 = vsyncpa [#allocation5], 1 }
 0x1d1   :  { %499 = vsyncpa [#allocation8], 1 }

</bundles_post_ra>
